<compile_context>
chip_gen: v5e
topology: v5e:2x2
jax: 0.10.0
libtpu: 0.0.40
codegen_flags: <defaults>
</compile_context>

<pallas_src>
import math

import jax
import jax.numpy as jnp
from jax.experimental import pallas as pl
from jax.experimental.pallas import tpu as pltpu

_GELU_C = math.sqrt(2.0 / math.pi)


# ----------------------------- kernels -------------------------------------

def _gelu_tanh_f32(h):
    # nn.GELU(approximate='tanh'): 0.5*x*(1+tanh(sqrt(2/pi)*(x+0.044715*x^3)))
    h2 = h * h
    return 0.5 * h * (1.0 + jnp.tanh(_GELU_C * (h + 0.044715 * (h2 * h))))


def _fused_tile(x_ref, wfc_ref, bfc_ref, wproj_ref):
    # (tm, C) @ (C, th) on MXU, bf16 inputs, f32 accumulation.
    h = jnp.dot(x_ref[...], wfc_ref[...], preferred_element_type=jnp.float32)
    h = h + bfc_ref[...]                       # bias in f32
    g = _gelu_tanh_f32(h)
    # second linear slice: (tm, th) @ (th, C), accumulated over H tiles
    return jnp.dot(g.astype(wproj_ref.dtype), wproj_ref[...],
                   preferred_element_type=jnp.float32)


def _mlp_kernel_f32out(x_ref, wfc_ref, bfc_ref, wproj_ref, bproj_ref, o_ref):
    """f32 output: accumulate directly into the resident output block."""
    j = pl.program_id(1)

    @pl.when(j == 0)
    def _():
        o_ref[...] = jnp.zeros_like(o_ref)

    o_ref[...] += _fused_tile(x_ref, wfc_ref, bfc_ref, wproj_ref)

    @pl.when(j == pl.num_programs(1) - 1)
    def _():
        o_ref[...] += bproj_ref[...]


def _mlp_kernel_scratch(x_ref, wfc_ref, bfc_ref, wproj_ref, bproj_ref, o_ref,
                        acc_ref):
    """Non-f32 output (e.g. bf16): accumulate in an f32 VMEM scratch."""
    j = pl.program_id(1)

    @pl.when(j == 0)
    def _():
        acc_ref[...] = jnp.zeros_like(acc_ref)

    acc_ref[...] += _fused_tile(x_ref, wfc_ref, bfc_ref, wproj_ref)

    @pl.when(j == pl.num_programs(1) - 1)
    def _():
        o_ref[...] = (acc_ref[...] + bproj_ref[...]).astype(o_ref.dtype)


# --------------------------- tile selection ---------------------------------

def _physical_vmem_bytes():
    try:
        return int(pltpu.get_tpu_info().vmem_capacity_bytes)
    except Exception:
        return 64 << 20  # conservative fallback (v7x per-TensorCore VMEM)


def _vmem_usage_bytes(tm, th, C, out_bytes, use_scratch):
    use = 2 * tm * C * 2              # x block (bf16), double-buffered
    use += 2 * tm * C * out_bytes     # output block, double-buffered
    use += 2 * C * th * 2             # W_fc tile (bf16), double-buffered
    use += 2 * th * C * 2             # W_proj tile (bf16), double-buffered
    use += 2 * (th + C) * 4 + 4096    # biases (+ padding slack)
    if use_scratch:
        use += tm * C * 4             # f32 accumulator scratch
    use += 2 * tm * th * 4            # h / g f32 temporaries
    return use


def _choose_tiles(M, C, H, out_bytes, use_scratch, budget):
    if M <= 256:
        tm_cands = [M]                 # whole M as one block (full-dim block)
    else:
        tm_cands = [t for t in (1024, 768, 512, 384, 256, 128) if t <= M] or [M]
    # Prefer th == H (weights fully VMEM-resident, fetched once for all M
    # tiles); otherwise stream H in the largest lane-aligned tile that fits.
    th_cands = [H] + [t for t in (1024, 512, 256, 128) if t < H and H % t == 0]
    for th in th_cands:
        for tm in tm_cands:
            if _vmem_usage_bytes(tm, th, C, out_bytes, use_scratch) <= budget:
                return tm, th
    return tm_cands[-1], th_cands[-1]


# ------------------------------ wrapper --------------------------------------

def prepare_mlp_params(w_fc, b_fc, w_proj, b_proj):
    """Cast / reshape params once at init so the per-call casts are no-ops."""
    return (w_fc.astype(jnp.bfloat16),
            b_fc.reshape(1, -1).astype(jnp.float32),
            w_proj.astype(jnp.bfloat16),
            b_proj.reshape(1, -1).astype(jnp.float32))


def mlp_pallas(x, w_fc, b_fc, w_proj, b_proj):
    """Fused GPT-2 MLP forward.

    x: (B, T, C).  w_fc: (C, 4C), b_fc: (4C,) or (1, 4C),
    w_proj: (4C, C), b_proj: (C,) or (1, C).
    Weights are stored transposed vs nn.Linear so the kernel computes x@W+b.
    """
    B, T, C = x.shape
    H = w_fc.shape[-1]
    M = B * T
    out_dtype = x.dtype
    out_bytes = jnp.dtype(out_dtype).itemsize
    use_scratch = out_dtype != jnp.float32

    # ---- chip-aware tile selection -----------------------------------------
    phys_vmem = _physical_vmem_bytes()
    budget = int(phys_vmem * 0.85)
    tm, th = _choose_tiles(M, C, H, out_bytes, use_scratch, budget)
    est = _vmem_usage_bytes(tm, th, C, out_bytes, use_scratch)
    vmem_limit = int(min(phys_vmem * 0.9, max(est * 3 // 2, 32 << 20)))

    Mp = pl.cdiv(M, tm) * tm

    # ---- dtype / layout prep (no-ops if params came from prepare_mlp_params)
    wfc_bf = w_fc.astype(jnp.bfloat16)
    wproj_bf = w_proj.astype(jnp.bfloat16)
    bfc2d = b_fc.reshape(1, H).astype(jnp.float32)
    bproj2d = b_proj.reshape(1, C).astype(jnp.float32)

    x2d = x.reshape(M, C)
    if Mp != M:
        x2d = jnp.pad(x2d, ((0, Mp - M), (0, 0)))
    x_bf = x2d.astype(jnp.bfloat16)

    grid = (Mp // tm, H // th)
    n_m_passes = grid[0]

    # ---- cost estimate (counts weight re-streaming across M-tile passes) ----
    weight_bytes = 2 * C * H * 2                       # both weights, bf16
    weight_stream = weight_bytes if th == H else weight_bytes * n_m_passes
    cost = pl.CostEstimate(
        flops=4 * M * C * H,                           # two matmuls
        transcendentals=M * H,                         # tanh in GELU
        bytes_accessed=(Mp * C * 2                     # x (bf16)
                        + weight_stream
                        + (H + C) * 4                  # biases (f32)
                        + Mp * C * out_bytes),         # output
    )

    in_specs = [
        pl.BlockSpec((tm, C), lambda i, j: (i, 0)),    # x rows (bf16)
        pl.BlockSpec((C, th), lambda i, j: (0, j)),    # W_fc H-tile
        pl.BlockSpec((1, th), lambda i, j: (0, j)),    # b_fc H-tile
        pl.BlockSpec((th, C), lambda i, j: (j, 0)),    # W_proj H-tile
        pl.BlockSpec((1, C), lambda i, j: (0, 0)),     # b_proj
    ]
    out_specs = pl.BlockSpec((tm, C), lambda i, j: (i, 0))

    if use_scratch:
        kernel = _mlp_kernel_scratch
        scratch_shapes = [pltpu.VMEM((tm, C), jnp.float32)]
    else:
        kernel = _mlp_kernel_f32out          # accumulate into resident o_ref
        scratch_shapes = []

    # TODO(synk): for small-M (decode) shapes on v7x, add a parallel grid axis
    # over output C columns so the second TensorCore gets work when grid[0]==1.
    out2d = pl.pallas_call(
        kernel,
        out_shape=jax.ShapeDtypeStruct((Mp, C), out_dtype),
        grid_spec=pltpu.PrefetchScalarGridSpec(
            num_scalar_prefetch=0,
            grid=grid,
            in_specs=in_specs,
            out_specs=out_specs,
            scratch_shapes=scratch_shapes),
        compiler_params=pltpu.CompilerParams(
            dimension_semantics=("parallel", "arbitrary"),
            vmem_limit_bytes=vmem_limit),
        cost_estimate=cost,
    )(x_bf, wfc_bf, bfc2d, wproj_bf, bproj2d)

    return out2d[:M].reshape(B, T, C)


# ------------------------------ reference ------------------------------------

def mlp_reference(x, w_fc, b_fc, w_proj, b_proj):
    h = jnp.einsum("btc,ch->bth", x, w_fc) + b_fc
    g = 0.5 * h * (1.0 + jnp.tanh(_GELU_C * (h + 0.044715 * h ** 3)))
    return jnp.einsum("bth,hc->btc", g, w_proj) + b_proj


if __name__ == "__main__":
    # Small config consistent with the module: n_embd=32 -> hidden=128.
    B, T, C = 2, 8, 32
    H = 4 * C

    key = jax.random.PRNGKey(0)
    kx, kwf, kbf, kwp, kbp = jax.random.split(key, 5)

    x = jax.random.normal(kx, (B, T, C), dtype=jnp.float32)
    # Mimic nn.Linear's uniform(-1/sqrt(fan_in), 1/sqrt(fan_in)) init.
    w_fc = jax.random.uniform(kwf, (C, H), jnp.float32,
                              -1.0 / math.sqrt(C), 1.0 / math.sqrt(C))
    b_fc = jax.random.uniform(kbf, (H,), jnp.float32,
                              -1.0 / math.sqrt(C), 1.0 / math.sqrt(C))
    w_proj = jax.random.uniform(kwp, (H, C), jnp.float32,
                                -1.0 / math.sqrt(H), 1.0 / math.sqrt(H))
    b_proj = jax.random.uniform(kbp, (C,), jnp.float32,
                                -1.0 / math.sqrt(H), 1.0 / math.sqrt(H))

    # Hoist bf16 weight casts out of the hot path (done once at init).
    params = prepare_mlp_params(w_fc, b_fc, w_proj, b_proj)
    mlp = jax.jit(mlp_pallas)

    out = mlp(x, *params)
    out = jax.block_until_ready(out)

    ref = mlp_reference(x, w_fc, b_fc, w_proj, b_proj)
    assert out.shape == (B, T, C)
    # bf16 matmul inputs (f32 accumulation) => loosened tolerance vs f32 ref.
    assert jnp.allclose(out, ref, atol=2e-2, rtol=2e-2), "mismatch vs reference"

    print("KERNEL_OK")
</pallas_src>

<mosaic_0001>
module attributes {stable_mosaic.version = 11 : i64} {
  func.func @_mlp_kernel_f32out(%arg0: i32, %arg1: i32, %arg2: memref<16x32xbf16, #tpu.memory_space<vmem>>, %arg3: memref<32x128xbf16, #tpu.memory_space<vmem>>, %arg4: memref<1x128xf32, #tpu.memory_space<vmem>>, %arg5: memref<128x32xbf16, #tpu.memory_space<vmem>>, %arg6: memref<1x32xf32, #tpu.memory_space<vmem>>, %arg7: memref<16x32xf32, #tpu.memory_space<vmem>>) attributes {dimension_semantics = [#tpu.dimension_semantics<parallel>, #tpu.dimension_semantics<arbitrary>], iteration_bounds = array<i64: 1, 1>, scalar_prefetch = 0 : i64, scratch_operands = 0 : i64, tpu.core_type = #tpu.core_type<tc>, window_params = [{transform_indices = @transform_0, window_bounds = array<i64: 16, 32>}, {transform_indices = @transform_1, window_bounds = array<i64: 32, 128>}, {transform_indices = @transform_2, window_bounds = array<i64: 1, 128>}, {transform_indices = @transform_3, window_bounds = array<i64: 128, 32>}, {pipeline_mode = #tpu.pipeline_mode<synchronous>, transform_indices = @transform_4, window_bounds = array<i64: 1, 32>}, {transform_indices = @transform_5, window_bounds = array<i64: 16, 32>}]} {
    %c0_i32 = arith.constant 0 : i32
    %0 = arith.cmpi eq, %arg1, %c0_i32 : i32
    %1 = arith.extui %0 : i1 to i32
    %c0_i32_0 = arith.constant 0 : i32
    %2 = arith.cmpi ne, %1, %c0_i32_0 : i32
    scf.if %2 {
      %cst_19 = arith.constant 0.000000e+00 : f32
      %31 = vector.broadcast %cst_19 : f32 to vector<16x32xf32>
      %c0_20 = arith.constant 0 : index
      %c0_21 = arith.constant 0 : index
      %32 = vector.load %arg7[%c0_20, %c0_21] : memref<16x32xf32, #tpu.memory_space<vmem>>, vector<16x32xf32>
      tpu.vector_store %arg7[%c0_20, %c0_21], %31 {strides = array<i32>} : memref<16x32xf32, #tpu.memory_space<vmem>>, vector<16x32xf32>,
    } else {
    }
    %c0 = arith.constant 0 : index
    %c0_1 = arith.constant 0 : index
    %3 = vector.load %arg7[%c0, %c0_1] : memref<16x32xf32, #tpu.memory_space<vmem>>, vector<16x32xf32>
    %c0_2 = arith.constant 0 : index
    %c0_3 = arith.constant 0 : index
    %4 = vector.load %arg2[%c0_2, %c0_3] : memref<16x32xbf16, #tpu.memory_space<vmem>>, vector<16x32xbf16>
    %c0_4 = arith.constant 0 : index
    %c0_5 = arith.constant 0 : index
    %5 = vector.load %arg3[%c0_4, %c0_5] : memref<32x128xbf16, #tpu.memory_space<vmem>>, vector<32x128xbf16>
    %cst = arith.constant dense<0.000000e+00> : vector<16x128xf32>
    %6 = tpu.matmul %4, %5, %cst {dimension_numbers = #tpu.dot_dimension_numbers<[1], [0], [0], [1], [0, 0, 1, 1], [], []>} : vector<16x32xbf16>, vector<32x128xbf16>, vector<16x128xf32> -> vector<16x128xf32>
    %c0_6 = arith.constant 0 : index
    %c0_7 = arith.constant 0 : index
    %7 = vector.load %arg4[%c0_6, %c0_7] : memref<1x128xf32, #tpu.memory_space<vmem>>, vector<1x128xf32>
    %8 = vector.broadcast %7 : vector<1x128xf32> to vector<16x128xf32>
    %9 = arith.addf %6, %8 : vector<16x128xf32>
    %10 = arith.mulf %9, %9 : vector<16x128xf32>
    %cst_8 = arith.constant 5.000000e-01 : f32
    %11 = vector.broadcast %cst_8 : f32 to vector<16x128xf32>
    %12 = arith.mulf %11, %9 : vector<16x128xf32>
    %13 = arith.mulf %10, %9 : vector<16x128xf32>
    %cst_9 = arith.constant 4.471500e-02 : f32
    %14 = vector.broadcast %cst_9 : f32 to vector<16x128xf32>
    %15 = arith.mulf %14, %13 : vector<16x128xf32>
    %16 = arith.addf %9, %15 : vector<16x128xf32>
    %cst_10 = arith.constant 0.797884583 : f32
    %17 = vector.broadcast %cst_10 : f32 to vector<16x128xf32>
    %18 = arith.mulf %17, %16 : vector<16x128xf32>
    %19 = math.tanh %18 : vector<16x128xf32>
    %cst_11 = arith.constant 1.000000e+00 : f32
    %20 = vector.broadcast %cst_11 : f32 to vector<16x128xf32>
    %21 = arith.addf %20, %19 : vector<16x128xf32>
    %22 = arith.mulf %12, %21 : vector<16x128xf32>
    %23 = arith.truncf %22 : vector<16x128xf32> to vector<16x128xbf16>
    %c0_12 = arith.constant 0 : index
    %c0_13 = arith.constant 0 : index
    %24 = vector.load %arg5[%c0_12, %c0_13] : memref<128x32xbf16, #tpu.memory_space<vmem>>, vector<128x32xbf16>
    %cst_14 = arith.constant dense<0.000000e+00> : vector<16x32xf32>
    %25 = tpu.matmul %23, %24, %cst_14 {dimension_numbers = #tpu.dot_dimension_numbers<[1], [0], [0], [1], [0, 0, 1, 1], [], []>} : vector<16x128xbf16>, vector<128x32xbf16>, vector<16x32xf32> -> vector<16x32xf32>
    %26 = arith.addf %3, %25 : vector<16x32xf32>
    %c0_15 = arith.constant 0 : index
    %c0_16 = arith.constant 0 : index
    %27 = vector.load %arg7[%c0_15, %c0_16] : memref<16x32xf32, #tpu.memory_space<vmem>>, vector<16x32xf32>
    tpu.vector_store %arg7[%c0_15, %c0_16], %26 {strides = array<i32>} : memref<16x32xf32, #tpu.memory_space<vmem>>, vector<16x32xf32>,
    %c0_i32_17 = arith.constant 0 : i32
    %28 = arith.cmpi eq, %arg1, %c0_i32_17 : i32
    %29 = arith.extui %28 : i1 to i32
    %c0_i32_18 = arith.constant 0 : i32
    %30 = arith.cmpi ne, %29, %c0_i32_18 : i32
    scf.if %30 {
      %c0_19 = arith.constant 0 : index
      %c0_20 = arith.constant 0 : index
      %31 = vector.load %arg7[%c0_19, %c0_20] : memref<16x32xf32, #tpu.memory_space<vmem>>, vector<16x32xf32>
      %c0_21 = arith.constant 0 : index
      %c0_22 = arith.constant 0 : index
      %32 = vector.load %arg6[%c0_21, %c0_22] : memref<1x32xf32, #tpu.memory_space<vmem>>, vector<1x32xf32>
      %33 = vector.broadcast %32 : vector<1x32xf32> to vector<16x32xf32>
      %34 = arith.addf %31, %33 : vector<16x32xf32>
      %c0_23 = arith.constant 0 : index
      %c0_24 = arith.constant 0 : index
      %35 = vector.load %arg7[%c0_23, %c0_24] : memref<16x32xf32, #tpu.memory_space<vmem>>, vector<16x32xf32>
      tpu.vector_store %arg7[%c0_23, %c0_24], %34 {strides = array<i32>} : memref<16x32xf32, #tpu.memory_space<vmem>>, vector<16x32xf32>,
    } else {
    }
    return
  }
  func.func @transform_0(%arg0: i32, %arg1: i32) -> (i32, i32) {
    %c0_i32 = arith.constant 0 : i32
    %c0_i32_0 = arith.constant 0 : i32
    return %arg0, %c0_i32 : i32, i32
  }
  func.func @transform_1(%arg0: i32, %arg1: i32) -> (i32, i32) {
    %c0_i32 = arith.constant 0 : i32
    %c0_i32_0 = arith.constant 0 : i32
    return %c0_i32, %arg1 : i32, i32
  }
  func.func @transform_2(%arg0: i32, %arg1: i32) -> (i32, i32) {
    %c0_i32 = arith.constant 0 : i32
    %c0_i32_0 = arith.constant 0 : i32
    return %c0_i32, %arg1 : i32, i32
  }
  func.func @transform_3(%arg0: i32, %arg1: i32) -> (i32, i32) {
    %c0_i32 = arith.constant 0 : i32
    %c0_i32_0 = arith.constant 0 : i32
    return %arg1, %c0_i32 : i32, i32
  }
  func.func @transform_4(%arg0: i32, %arg1: i32) -> (i32, i32) {
    %c0_i32 = arith.constant 0 : i32
    %c0_i32_0 = arith.constant 0 : i32
    %c0_i32_1 = arith.constant 0 : i32
    return %c0_i32, %c0_i32_0 : i32, i32
  }
  func.func @transform_5(%arg0: i32, %arg1: i32) -> (i32, i32) {
    %c0_i32 = arith.constant 0 : i32
    %c0_i32_0 = arith.constant 0 : i32
    return %arg0, %c0_i32 : i32, i32
  }
}

</mosaic_0001>

<bundles_post_ra>
// kernel: mlp_pallas.1
= control target key start
LH: loop header
LB: loop body
LE: loop exit
PB: predicated region body
PF: predicated region fallthrough
CT: control target
= control target key end

     0   :  { %s383_s0 = inlined_call_operand.vmem [shape: bf16[16,32], index: 0, kind: input, shape index: {}]   ;;  %s384_s1 = inlined_call_operand.vmem [shape: bf16[32,128], index: 1, kind: input, shape index: {}]   ;;  %s385_s2 = inlined_call_operand.vmem [shape: f32[1,128], index: 2, kind: input, shape index: {}]   ;;  %s386_s3 = inlined_call_operand.vmem [shape: bf16[128,32], index: 3, kind: input, shape index: {}]   ;;  %s387_s4 = inlined_call_operand.vmem [shape: f32[1,32], index: 4, kind: input, shape index: {}]   ;;  %s388_s5 = inlined_call_operand.hbm [shape: f32[16,32], index: 5, kind: output, shape index: {}]  }
   0x1   :  { %v255_v0 = vld [vmem:[%s384_s1 + $0x8] sm:$0xff]  ;;  %v254_v1 = vld [vmem:[%s384_s1] sm:$0xff] }
   0x2   :  { %68 = vmatpush.bf16.msra.mxu0 %v255_v0 }
   0x3   :  { %10 = vsyncpa [#allocation3], 0  ;;  %v253_v2 = vld [vmem:[%s383_s0] sm:$0xff]  ;;  %vm26_vm0 = vcmask 261120   ;;  %v263_v3 = vld [vmem:[%s386_s3 + $0x38] sm:$0xff]  ;;  %v300_v15 = vmov 0.0  }
   0x4   :  { %159 = vmatpush.bf16.msra.mxu1 %v263_v3  ;;  %v262_v4 = vld [vmem:[%s386_s3 + $0x30] sm:$0xff]  ;;  %v261_v5 = vld [vmem:[%s386_s3 + $0x28] sm:$0xff]  ;;  %v260_v6 = vld [vmem:[%s386_s3 + $0x20] sm:$0xff]  ;;  %27 = vst.msk [vmem:[#allocation2] sm:$0xff] %vm26_vm0, %v300_v15  ;;  %s301_s15 = smov [#allocation2]   ;;  %s196_s19 = sshll.u32 %s388_s5, 4  ;;  %s197_s19 = int_to_ptr.hbm [resolvable:$true] %s196_s19 }
   0x5   :  { %v259_v7 = vld [vmem:[%s386_s3 + $0x18] sm:$0xff]  ;;  %v258_v8 = vld [vmem:[%s386_s3 + $0x10] sm:$0xff]  ;;  %v257_v9 = vld [vmem:[%s386_s3 + $0x8] sm:$0xff]  ;;  %28 = vst.msk [vmem:[#allocation2 + $0x8] sm:$0xff] %vm26_vm0, %v300_v15  ;;  %s194_s16 = sshll.u32 %s301_s15, 4  ;;  %s303_s20 = smov 8   ;;  %s195_s16 = int_to_ptr.vmem [resolvable:$true] %s194_s16 }
   0x6   :  { %69 = vmatpush.bf16.msra.mxu0 %v254_v1  ;;  %v256_v10 = vld [vmem:[%s386_s3] sm:$0xff] }
   0x7   :  { %v268_v11 = vld [vmem:[%s385_s2] ss:$0 sm:$0xff] }
   0x8   :  { %160 = vmatpush.bf16.msra.mxu1 %v262_v4  ;;  %v269_v40 = vld [vmem:[%s387_s4] ss:$0 sm:$0xff]  ;;  %s302_s4 = smov 128  }
   0x9   :  { %220 = vmatmul.msk.bf16.vlgmr.msra.gmra.mxu0 %vm26_vm0, %v253_v2 }
   0xb   :  { %v29_v36 = vld [vmem:[#allocation2] sm:$0xff] }
   0xc   :  { %161 = vmatpush.bf16.msra.mxu1 %v261_v5  ;;  %v30_v39 = vld [vmem:[#allocation2 + $0x8] sm:$0xff] }
  0x10   :  { %162 = vmatpush.bf16.msra.mxu1 %v260_v6 }
  0x14   :  { %163 = vmatpush.bf16.msra.mxu1 %v259_v7 }
  0x18   :  { %164 = vmatpush.bf16.msra.mxu1 %v258_v8 }
  0x1c   :  { %165 = vmatpush.bf16.msra.mxu1 %v257_v9 }
  0x20   :  { %166 = vmatpush.bf16.msra.mxu1 %v256_v10 }
  0x86   :  { %v71_v12 = vpop.f32.mrf.mxu0 }
  0x87   :  { %v72_v13 = vadd.f32 %v268_v11, %v71_v12 }
  0x89   :  { %v76_v14 = vmul.f32 %v72_v13, %v72_v13  ;;  %v78_v30 = vmul.f32 0.5, %v72_v13 }
  0x8b   :  { %v80_v16 = vmul.f32 %v76_v14, %v72_v13 }
  0x8d   :  { %v82_v17 = vmul.f32 0.044715, %v80_v16 }
  0x8e   :  { %v73_v18 = vpop.f32.mrf.mxu0 }
  0x8f   :  { %v74_v19 = vadd.f32 %v268_v11, %v73_v18  ;;  %v84_v20 = vadd.f32 %v82_v17, %v72_v13 }
  0x91   :  { %v77_v21 = vmul.f32 %v74_v19, %v74_v19  ;;  %v86_v23 = vmul.f32 0.7978846, %v84_v20  ;;  %v79_v31 = vmul.f32 0.5, %v74_v19 }
  0x93   :  { %v81_v22 = vmul.f32 %v77_v21, %v74_v19  ;;  %270 = vtanh.f32 %v86_v23 }
  0x95   :  { %v83_v24 = vmul.f32 0.044715, %v81_v22 }
  0x97   :  { %v85_v25 = vadd.f32 %v83_v24, %v74_v19 }
  0x99   :  { %v87_v26 = vmul.f32 0.7978846, %v85_v25  ;;  %v271_v27 = vpop.eup %270 }
  0x9a   :  { %v90_v28 = vadd.f32 1.0, %v271_v27 }
  0x9b   :  { %272 = vtanh.f32 %v87_v26 }
  0x9c   :  { %v92_v33 = vmul.f32 %v90_v28, %v78_v30 }
  0xa1   :  { %v273_v29 = vpop.eup %272 }
  0xa2   :  { %v91_v32 = vadd.f32 1.0, %v273_v29 }
  0xa4   :  { %v93_v34 = vmul.f32 %v91_v32, %v79_v31 }
  0xa6   :  { %v94_v35 = vpack.c.bf16 %v93_v34, %v92_v33 }
  0xa8   :  { %167 = vmatmul.bf16.vlgmr.msra.gmra.mxu1 %v94_v35 }
 0x125   :  { %v168_v37 = vpop.f32.mrf.mxu1 }
 0x126   :  { %v173_v38 = vadd.f32 %v168_v37, %v29_v36 }
 0x128   :  { %175 = vst.msk [vmem:[#allocation2] sm:$0xff] %vm26_vm0, %v173_v38 }
 0x12d   :  { %v170_v41 = vpop.f32.mrf.mxu1 }
 0x12e   :  { %v174_v42 = vadd.f32 %v170_v41, %v30_v39 }
 0x12f   :  { %v180_v43 = vld [vmem:[#allocation2] sm:$0xff] }
 0x130   :  { %v186_v44 = vadd.f32 %v269_v40, %v180_v43  ;;  %176 = vst.msk [vmem:[#allocation2 + $0x8] sm:$0xff] %vm26_vm0, %v174_v42 }
 0x132   :  { %188 = vst.msk [vmem:[#allocation2] sm:$0xff] %vm26_vm0, %v186_v44 }
 0x137   :  { %v181_v45 = vld [vmem:[#allocation2 + $0x8] sm:$0xff] }
 0x138   :  { %v187_v46 = vadd.f32 %v269_v40, %v181_v45 }
 0x13a   :  { %189 = vst.msk [vmem:[#allocation2 + $0x8] sm:$0xff] %vm26_vm0, %v187_v46 }
 0x13b   :  { %202 = dma.vmem_to_hbm [thread:$0]  %s195_s16, 256, %s197_s19, [#allocation3], %s302_s4, %s302_s4, %s303_s20  }
 0x13c   :  { %298 = dma.done.wait [#allocation3], 256  }
 0x13d   :  { %299 = vsyncadd [#allocation3], 4294967040 }
 0x13e   :  { %207 = vsyncpa [#allocation3], 1 }

</bundles_post_ra>
